<compile_context>
chip_gen: v6e
topology: v6e:2x2x1
jax: 0.10.0
libtpu: 0.0.40
codegen_flags: <defaults>
</compile_context>

<pallas_src>
import functools
import math

import jax
import jax.numpy as jnp
from jax import lax
from jax.experimental import pallas as pl
from jax.experimental.pallas import tpu as pltpu

EPS = 1e-5


def barlow_kernel(ya_ref, yb_ref, wb_ref, w1_ref, g1_ref, b1_ref,
                  w2_ref, g2_ref, b2_ref, w3_ref,
                  diag_ref, off_ref, *, batch_size, lambd, matmul_dtype):
    """Fused: backbone -> projector -> final BN for BOTH branches (stacked) -> BT loss."""
    b = ya_ref.shape[0]                               # per-branch batch rows (BN statistics)
    inv_n = jnp.float32(1.0 / b)
    inv_bs = jnp.float32(1.0 / batch_size)

    def mm(x, w_ref):
        # bf16 (or f32) MXU operands, f32 accumulation.
        return jnp.dot(x.astype(matmul_dtype), w_ref[...].astype(matmul_dtype),
                       preferred_element_type=jnp.float32)

    def bn_half(hx, gamma, beta):
        # BatchNorm1d (training mode, biased variance) over one branch's B rows, f32 math.
        mu = jnp.sum(hx, axis=0, keepdims=True) * inv_n
        c = hx - mu                                   # centered activation (reused)
        var = jnp.sum(c * c, axis=0, keepdims=True) * inv_n
        s = lax.rsqrt(var + EPS)                      # EUP slot -> effectively free
        if gamma is not None:                         # fold gamma into the scale
            s = s * gamma
        y = c * s
        if beta is not None:
            y = y + beta
        return y

    def dual_bn(h, gamma=None, beta=None):
        # Per-branch BN via contiguous, sublane-aligned row slices (b % 8 == 0 asserted
        # in the wrapper) -- no row masks, stats reduce over B rows only.
        return jnp.concatenate([bn_half(h[:b], gamma, beta),
                                bn_half(h[b:], gamma, beta)], axis=0)

    # backbone: bias-free Linear(in_dim -> repr_dim) on each branch, then stack (M = 2B
    # for every projector matmul -> full MXU row utilization).
    h = jnp.concatenate([mm(ya_ref[...], wb_ref), mm(yb_ref[...], wb_ref)], axis=0)
    # projector block 1: Linear -> BN -> ReLU   (store activation once in matmul dtype)
    h = jnp.maximum(dual_bn(mm(h, w1_ref), g1_ref[...], b1_ref[...]), 0.0).astype(matmul_dtype)
    # projector block 2: Linear -> BN -> ReLU
    h = jnp.maximum(dual_bn(mm(h, w2_ref), g2_ref[...], b2_ref[...]), 0.0).astype(matmul_dtype)
    # projector final Linear + final BatchNorm1d(affine=False)
    z = dual_bn(mm(h, w3_ref))                        # f32 (2B, 4D)

    za_m = z[:b].astype(matmul_dtype)                 # bn(Z_a)  (B, 4D)
    zb_m = z[b:].astype(matmul_dtype)                 # bn(Z_b)  (B, 4D)
    # cc = bn(Z_a).T @ bn(Z_b) / batch_size -- contract the batch axis directly (no .T),
    # bf16 MXU operands with f32 accumulation.
    cc = lax.dot_general(za_m, zb_m, dimension_numbers=(((0,), (0,)), ((), ())),
                         preferred_element_type=jnp.float32) * inv_bs

    # Diagonal of cc computed directly as a (1, 4D) vector from the same bf16-rounded
    # values the MXU consumed (products exact in f32) -- no (d,d) eye masks needed.
    diag = jnp.sum(za_m.astype(jnp.float32) * zb_m.astype(jnp.float32),
                   axis=0, keepdims=True) * inv_bs

    total_sq = jnp.sum(cc * cc)                       # sum of ALL cc^2
    diag_sq = jnp.sum(diag * diag)                    # sum of diagonal cc^2
    dm1 = diag - 1.0
    diag_ref[0, 0] = jnp.sum(dm1 * dm1)
    off_ref[0, 0] = jnp.float32(lambd) * (total_sq - diag_sq)


def prepare_params(params, use_bf16=True):
    """Cast weights to the matmul dtype ONCE.

    Hold the returned dict persistently across training steps -- re-casting inside the
    per-step wrapper would add a full HBM read/write pass over every weight each call.
    """
    mdt = jnp.bfloat16 if use_bf16 else jnp.float32
    out = {}
    for k in ("wb", "w1", "w2", "w3"):
        out[k] = jnp.asarray(params[k]).astype(mdt)
    for k in ("g1", "b1", "g2", "b2"):
        out[k] = jnp.asarray(params[k]).astype(jnp.float32)
    return out


def barlow_twins_forward(y_a, y_b, params, *, batch_size, lambd, use_bf16=True):
    """Training-mode forward: returns (diag_loss, lambd * off_diag_loss).

    `params` should come from prepare_params() (weights already in the matmul dtype).
    """
    assert y_a.shape == y_b.shape and y_a.ndim == 2
    b, in_dim = y_a.shape
    repr_dim = params["wb"].shape[1]
    d4 = params["w3"].shape[1]
    # Row-slice BN and za/zb slicing require sublane-aligned per-branch batches; the wide
    # activations want lane-aligned feature dims.
    assert b % 8 == 0, "per-branch batch must be a multiple of 8 (f32 sublane tile)"
    assert d4 % 128 == 0, "projector width (4*repr_dim) must be a multiple of 128 lanes"

    mdt = jnp.bfloat16 if use_bf16 else jnp.float32
    two_b = 2 * b

    args = (
        y_a.astype(mdt), y_b.astype(mdt),             # two refs: no HBM concat, half DMA
        params["wb"], params["w1"],
        params["g1"], params["b1"],
        params["w2"],
        params["g2"], params["b2"],
        params["w3"],
    )

    flops = (2 * two_b * (in_dim * repr_dim + repr_dim * d4 + 2 * d4 * d4)
             + 2 * b * d4 * d4)                       # + cc matmul
    bytes_accessed = int(sum(int(a.size) * a.dtype.itemsize for a in args)) + 2 * 4
    cost = pl.CostEstimate(flops=int(flops), transcendentals=int(6 * d4),
                           bytes_accessed=bytes_accessed)

    # Generation-aware scoped-VMEM limit: inputs + a handful of (2B, 4D) temporaries +
    # the (4D, 4D) cc tile, with headroom, clamped to ~90% of this chip's VMEM.
    try:
        info = pltpu.get_tpu_info()
        vmem_cap = int(getattr(info, "vmem_capacity_bytes", 64 * 1024 * 1024))
    except Exception:
        vmem_cap = 64 * 1024 * 1024
    resident = bytes_accessed + d4 * d4 * 4 + 10 * two_b * d4 * 4
    vmem_limit = int(min(max(2 * resident, 16 * 1024 * 1024), int(0.9 * vmem_cap)))

    kern = functools.partial(barlow_kernel, batch_size=batch_size, lambd=lambd,
                             matmul_dtype=mdt)
    vmem = pl.BlockSpec(memory_space=pltpu.MemorySpace.VMEM)
    smem = pl.BlockSpec(memory_space=pltpu.MemorySpace.SMEM)

    diag, off = pl.pallas_call(
        kern,
        out_shape=(jax.ShapeDtypeStruct((1, 1), jnp.float32),
                   jax.ShapeDtypeStruct((1, 1), jnp.float32)),
        in_specs=[vmem] * len(args),
        out_specs=(smem, smem),
        compiler_params=pltpu.CompilerParams(vmem_limit_bytes=vmem_limit),
        cost_estimate=cost,
    )(*args)
    return diag[0, 0], off[0, 0]


# ----- pure-JAX reference (same bf16 matmul-operand policy in the network, f32 BN math) -----
def _reference(y_a, y_b, params, *, batch_size, lambd, use_bf16=True):
    mdt = jnp.bfloat16 if use_bf16 else jnp.float32

    def mm(x, w):
        return jnp.dot(x.astype(mdt), w.astype(mdt), preferred_element_type=jnp.float32)

    def bn(h, gamma=None, beta=None):
        mu = jnp.mean(h, axis=0, keepdims=True)
        var = jnp.mean((h - mu) ** 2, axis=0, keepdims=True)
        y = (h - mu) * lax.rsqrt(var + EPS)
        if gamma is not None:
            y = y * gamma + beta
        return y

    def branch(x):
        h = mm(x, params["wb"])
        h = jnp.maximum(bn(mm(h, params["w1"]), params["g1"], params["b1"]), 0.0)
        h = jnp.maximum(bn(mm(h, params["w2"]), params["g2"], params["b2"]), 0.0)
        return bn(mm(h, params["w3"]))

    za, zb = branch(y_a), branch(y_b)
    cc = (za.T @ zb) / batch_size
    d = jnp.diagonal(cc)
    diag = jnp.sum((d - 1.0) ** 2)
    off = jnp.sum(cc ** 2) - jnp.sum(d ** 2)
    return diag, lambd * off


if __name__ == "__main__":
    # Small shapes consistent with the module: repr_dim=32 -> projector width 4*32=128.
    B = 8            # per-branch batch (also the `batch_size` divisor in the loss)
    IN_DIM = 32      # flat input feature dim consumed by the synthetic linear backbone
    REPR_DIM = 32
    D4 = 4 * REPR_DIM
    LAMBD = 0.005

    key = jax.random.PRNGKey(0)
    k = jax.random.split(key, 6)
    raw_params = {
        "wb": jax.random.normal(k[0], (IN_DIM, REPR_DIM), jnp.float32) / math.sqrt(IN_DIM),
        "w1": jax.random.normal(k[1], (REPR_DIM, D4), jnp.float32) / math.sqrt(REPR_DIM),
        "g1": jnp.ones((1, D4), jnp.float32),
        "b1": jnp.zeros((1, D4), jnp.float32),
        "w2": jax.random.normal(k[2], (D4, D4), jnp.float32) / math.sqrt(D4),
        "g2": jnp.ones((1, D4), jnp.float32),
        "b2": jnp.zeros((1, D4), jnp.float32),
        "w3": jax.random.normal(k[3], (D4, D4), jnp.float32) / math.sqrt(D4),
    }
    params = prepare_params(raw_params, use_bf16=True)   # one-time weight cast
    y_a = jax.random.normal(k[4], (B, IN_DIM), jnp.float32)
    y_b = jax.random.normal(k[5], (B, IN_DIM), jnp.float32)

    diag_loss, off_loss = barlow_twins_forward(y_a, y_b, params,
                                               batch_size=B, lambd=LAMBD, use_bf16=True)
    jax.block_until_ready((diag_loss, off_loss))

    ref_diag, ref_off = _reference(y_a, y_b, raw_params, batch_size=B, lambd=LAMBD,
                                   use_bf16=True)
    assert jnp.allclose(diag_loss, ref_diag, rtol=2e-2, atol=2e-2), (diag_loss, ref_diag)
    assert jnp.allclose(off_loss, ref_off, rtol=2e-2, atol=2e-2), (off_loss, ref_off)

    print("KERNEL_OK")
</pallas_src>

<mosaic_0001>
module attributes {stable_mosaic.version = 11 : i64} {
  func.func @barlow_kernel(%arg0: memref<8x32xbf16, #tpu.memory_space<vmem>>, %arg1: memref<8x32xbf16, #tpu.memory_space<vmem>>, %arg2: memref<32x32xbf16, #tpu.memory_space<vmem>>, %arg3: memref<32x128xbf16, #tpu.memory_space<vmem>>, %arg4: memref<1x128xf32, #tpu.memory_space<vmem>>, %arg5: memref<1x128xf32, #tpu.memory_space<vmem>>, %arg6: memref<128x128xbf16, #tpu.memory_space<vmem>>, %arg7: memref<1x128xf32, #tpu.memory_space<vmem>>, %arg8: memref<1x128xf32, #tpu.memory_space<vmem>>, %arg9: memref<128x128xbf16, #tpu.memory_space<vmem>>, %arg10: memref<1x1xf32, #tpu.memory_space<smem>>, %arg11: memref<1x1xf32, #tpu.memory_space<smem>>) attributes {dimension_semantics = [], scalar_prefetch = 0 : i64, scratch_operands = 0 : i64, tpu.core_type = #tpu.core_type<tc>} {
    %c0 = arith.constant 0 : index
    %c0_0 = arith.constant 0 : index
    %0 = vector.load %arg0[%c0, %c0_0] : memref<8x32xbf16, #tpu.memory_space<vmem>>, vector<8x32xbf16>
    %c0_1 = arith.constant 0 : index
    %c0_2 = arith.constant 0 : index
    %1 = vector.load %arg2[%c0_1, %c0_2] : memref<32x32xbf16, #tpu.memory_space<vmem>>, vector<32x32xbf16>
    %cst = arith.constant dense<0.000000e+00> : vector<8x32xf32>
    %2 = tpu.matmul %0, %1, %cst {dimension_numbers = #tpu.dot_dimension_numbers<[1], [0], [0], [1], [0, 0, 1, 1], [], []>} : vector<8x32xbf16>, vector<32x32xbf16>, vector<8x32xf32> -> vector<8x32xf32>
    %c0_3 = arith.constant 0 : index
    %c0_4 = arith.constant 0 : index
    %3 = vector.load %arg1[%c0_3, %c0_4] : memref<8x32xbf16, #tpu.memory_space<vmem>>, vector<8x32xbf16>
    %c0_5 = arith.constant 0 : index
    %c0_6 = arith.constant 0 : index
    %4 = vector.load %arg2[%c0_5, %c0_6] : memref<32x32xbf16, #tpu.memory_space<vmem>>, vector<32x32xbf16>
    %cst_7 = arith.constant dense<0.000000e+00> : vector<8x32xf32>
    %5 = tpu.matmul %3, %4, %cst_7 {dimension_numbers = #tpu.dot_dimension_numbers<[1], [0], [0], [1], [0, 0, 1, 1], [], []>} : vector<8x32xbf16>, vector<32x32xbf16>, vector<8x32xf32> -> vector<8x32xf32>
    %6 = tpu.concatenate %2, %5 in 0 : vector<8x32xf32>, vector<8x32xf32> -> vector<16x32xf32>
    %7 = arith.truncf %6 : vector<16x32xf32> to vector<16x32xbf16>
    %c0_8 = arith.constant 0 : index
    %c0_9 = arith.constant 0 : index
    %8 = vector.load %arg3[%c0_8, %c0_9] : memref<32x128xbf16, #tpu.memory_space<vmem>>, vector<32x128xbf16>
    %cst_10 = arith.constant dense<0.000000e+00> : vector<16x128xf32>
    %9 = tpu.matmul %7, %8, %cst_10 {dimension_numbers = #tpu.dot_dimension_numbers<[1], [0], [0], [1], [0, 0, 1, 1], [], []>} : vector<16x32xbf16>, vector<32x128xbf16>, vector<16x128xf32> -> vector<16x128xf32>
    %c0_11 = arith.constant 0 : index
    %c0_12 = arith.constant 0 : index
    %10 = vector.load %arg4[%c0_11, %c0_12] : memref<1x128xf32, #tpu.memory_space<vmem>>, vector<1x128xf32>
    %c0_13 = arith.constant 0 : index
    %c0_14 = arith.constant 0 : index
    %11 = vector.load %arg5[%c0_13, %c0_14] : memref<1x128xf32, #tpu.memory_space<vmem>>, vector<1x128xf32>
    %12 = vector.extract_strided_slice %9 {offsets = [0, 0], sizes = [8, 128], strides = [1, 1]} : vector<16x128xf32> to vector<8x128xf32>
    %cst_15 = arith.constant dense<0.000000e+00> : vector<128xf32>
    %13 = vector.multi_reduction <add>, %12, %cst_15 [0] : vector<8x128xf32> to vector<128xf32>
    %14 = vector.shape_cast %13 : vector<128xf32> to vector<1x128xf32>
    %cst_16 = arith.constant 1.250000e-01 : f32
    %15 = vector.broadcast %cst_16 : f32 to vector<1x128xf32>
    %16 = arith.mulf %14, %15 : vector<1x128xf32>
    %17 = vector.broadcast %16 : vector<1x128xf32> to vector<8x128xf32>
    %18 = arith.subf %12, %17 : vector<8x128xf32>
    %19 = arith.mulf %18, %18 : vector<8x128xf32>
    %cst_17 = arith.constant dense<0.000000e+00> : vector<128xf32>
    %20 = vector.multi_reduction <add>, %19, %cst_17 [0] : vector<8x128xf32> to vector<128xf32>
    %21 = vector.shape_cast %20 : vector<128xf32> to vector<1x128xf32>
    %cst_18 = arith.constant 1.250000e-01 : f32
    %22 = vector.broadcast %cst_18 : f32 to vector<1x128xf32>
    %23 = arith.mulf %21, %22 : vector<1x128xf32>
    %cst_19 = arith.constant 9.99999974E-6 : f32
    %24 = vector.broadcast %cst_19 : f32 to vector<1x128xf32>
    %25 = arith.addf %23, %24 : vector<1x128xf32>
    %26 = math.rsqrt %25 : vector<1x128xf32>
    %27 = arith.mulf %26, %10 : vector<1x128xf32>
    %28 = vector.broadcast %27 : vector<1x128xf32> to vector<8x128xf32>
    %29 = arith.mulf %18, %28 : vector<8x128xf32>
    %30 = vector.broadcast %11 : vector<1x128xf32> to vector<8x128xf32>
    %31 = arith.addf %29, %30 : vector<8x128xf32>
    %32 = vector.extract_strided_slice %9 {offsets = [8, 0], sizes = [8, 128], strides = [1, 1]} : vector<16x128xf32> to vector<8x128xf32>
    %cst_20 = arith.constant dense<0.000000e+00> : vector<128xf32>
    %33 = vector.multi_reduction <add>, %32, %cst_20 [0] : vector<8x128xf32> to vector<128xf32>
    %34 = vector.shape_cast %33 : vector<128xf32> to vector<1x128xf32>
    %cst_21 = arith.constant 1.250000e-01 : f32
    %35 = vector.broadcast %cst_21 : f32 to vector<1x128xf32>
    %36 = arith.mulf %34, %35 : vector<1x128xf32>
    %37 = vector.broadcast %36 : vector<1x128xf32> to vector<8x128xf32>
    %38 = arith.subf %32, %37 : vector<8x128xf32>
    %39 = arith.mulf %38, %38 : vector<8x128xf32>
    %cst_22 = arith.constant dense<0.000000e+00> : vector<128xf32>
    %40 = vector.multi_reduction <add>, %39, %cst_22 [0] : vector<8x128xf32> to vector<128xf32>
    %41 = vector.shape_cast %40 : vector<128xf32> to vector<1x128xf32>
    %cst_23 = arith.constant 1.250000e-01 : f32
    %42 = vector.broadcast %cst_23 : f32 to vector<1x128xf32>
    %43 = arith.mulf %41, %42 : vector<1x128xf32>
    %cst_24 = arith.constant 9.99999974E-6 : f32
    %44 = vector.broadcast %cst_24 : f32 to vector<1x128xf32>
    %45 = arith.addf %43, %44 : vector<1x128xf32>
    %46 = math.rsqrt %45 : vector<1x128xf32>
    %47 = arith.mulf %46, %10 : vector<1x128xf32>
    %48 = vector.broadcast %47 : vector<1x128xf32> to vector<8x128xf32>
    %49 = arith.mulf %38, %48 : vector<8x128xf32>
    %50 = vector.broadcast %11 : vector<1x128xf32> to vector<8x128xf32>
    %51 = arith.addf %49, %50 : vector<8x128xf32>
    %52 = tpu.concatenate %31, %51 in 0 : vector<8x128xf32>, vector<8x128xf32> -> vector<16x128xf32>
    %cst_25 = arith.constant 0.000000e+00 : f32
    %53 = vector.broadcast %cst_25 : f32 to vector<16x128xf32>
    %54 = arith.maximumf %52, %53 : vector<16x128xf32>
    %55 = arith.truncf %54 : vector<16x128xf32> to vector<16x128xbf16>
    %c0_26 = arith.constant 0 : index
    %c0_27 = arith.constant 0 : index
    %56 = vector.load %arg6[%c0_26, %c0_27] : memref<128x128xbf16, #tpu.memory_space<vmem>>, vector<128x128xbf16>
    %cst_28 = arith.constant dense<0.000000e+00> : vector<16x128xf32>
    %57 = tpu.matmul %55, %56, %cst_28 {dimension_numbers = #tpu.dot_dimension_numbers<[1], [0], [0], [1], [0, 0, 1, 1], [], []>} : vector<16x128xbf16>, vector<128x128xbf16>, vector<16x128xf32> -> vector<16x128xf32>
    %c0_29 = arith.constant 0 : index
    %c0_30 = arith.constant 0 : index
    %58 = vector.load %arg7[%c0_29, %c0_30] : memref<1x128xf32, #tpu.memory_space<vmem>>, vector<1x128xf32>
    %c0_31 = arith.constant 0 : index
    %c0_32 = arith.constant 0 : index
    %59 = vector.load %arg8[%c0_31, %c0_32] : memref<1x128xf32, #tpu.memory_space<vmem>>, vector<1x128xf32>
    %60 = vector.extract_strided_slice %57 {offsets = [0, 0], sizes = [8, 128], strides = [1, 1]} : vector<16x128xf32> to vector<8x128xf32>
    %cst_33 = arith.constant dense<0.000000e+00> : vector<128xf32>
    %61 = vector.multi_reduction <add>, %60, %cst_33 [0] : vector<8x128xf32> to vector<128xf32>
    %62 = vector.shape_cast %61 : vector<128xf32> to vector<1x128xf32>
    %cst_34 = arith.constant 1.250000e-01 : f32
    %63 = vector.broadcast %cst_34 : f32 to vector<1x128xf32>
    %64 = arith.mulf %62, %63 : vector<1x128xf32>
    %65 = vector.broadcast %64 : vector<1x128xf32> to vector<8x128xf32>
    %66 = arith.subf %60, %65 : vector<8x128xf32>
    %67 = arith.mulf %66, %66 : vector<8x128xf32>
    %cst_35 = arith.constant dense<0.000000e+00> : vector<128xf32>
    %68 = vector.multi_reduction <add>, %67, %cst_35 [0] : vector<8x128xf32> to vector<128xf32>
    %69 = vector.shape_cast %68 : vector<128xf32> to vector<1x128xf32>
    %cst_36 = arith.constant 1.250000e-01 : f32
    %70 = vector.broadcast %cst_36 : f32 to vector<1x128xf32>
    %71 = arith.mulf %69, %70 : vector<1x128xf32>
    %cst_37 = arith.constant 9.99999974E-6 : f32
    %72 = vector.broadcast %cst_37 : f32 to vector<1x128xf32>
    %73 = arith.addf %71, %72 : vector<1x128xf32>
    %74 = math.rsqrt %73 : vector<1x128xf32>
    %75 = arith.mulf %74, %58 : vector<1x128xf32>
    %76 = vector.broadcast %75 : vector<1x128xf32> to vector<8x128xf32>
    %77 = arith.mulf %66, %76 : vector<8x128xf32>
    %78 = vector.broadcast %59 : vector<1x128xf32> to vector<8x128xf32>
    %79 = arith.addf %77, %78 : vector<8x128xf32>
    %80 = vector.extract_strided_slice %57 {offsets = [8, 0], sizes = [8, 128], strides = [1, 1]} : vector<16x128xf32> to vector<8x128xf32>
    %cst_38 = arith.constant dense<0.000000e+00> : vector<128xf32>
    %81 = vector.multi_reduction <add>, %80, %cst_38 [0] : vector<8x128xf32> to vector<128xf32>
    %82 = vector.shape_cast %81 : vector<128xf32> to vector<1x128xf32>
    %cst_39 = arith.constant 1.250000e-01 : f32
    %83 = vector.broadcast %cst_39 : f32 to vector<1x128xf32>
    %84 = arith.mulf %82, %83 : vector<1x128xf32>
    %85 = vector.broadcast %84 : vector<1x128xf32> to vector<8x128xf32>
    %86 = arith.subf %80, %85 : vector<8x128xf32>
    %87 = arith.mulf %86, %86 : vector<8x128xf32>
    %cst_40 = arith.constant dense<0.000000e+00> : vector<128xf32>
    %88 = vector.multi_reduction <add>, %87, %cst_40 [0] : vector<8x128xf32> to vector<128xf32>
    %89 = vector.shape_cast %88 : vector<128xf32> to vector<1x128xf32>
    %cst_41 = arith.constant 1.250000e-01 : f32
    %90 = vector.broadcast %cst_41 : f32 to vector<1x128xf32>
    %91 = arith.mulf %89, %90 : vector<1x128xf32>
    %cst_42 = arith.constant 9.99999974E-6 : f32
    %92 = vector.broadcast %cst_42 : f32 to vector<1x128xf32>
    %93 = arith.addf %91, %92 : vector<1x128xf32>
    %94 = math.rsqrt %93 : vector<1x128xf32>
    %95 = arith.mulf %94, %58 : vector<1x128xf32>
    %96 = vector.broadcast %95 : vector<1x128xf32> to vector<8x128xf32>
    %97 = arith.mulf %86, %96 : vector<8x128xf32>
    %98 = vector.broadcast %59 : vector<1x128xf32> to vector<8x128xf32>
    %99 = arith.addf %97, %98 : vector<8x128xf32>
    %100 = tpu.concatenate %79, %99 in 0 : vector<8x128xf32>, vector<8x128xf32> -> vector<16x128xf32>
    %cst_43 = arith.constant 0.000000e+00 : f32
    %101 = vector.broadcast %cst_43 : f32 to vector<16x128xf32>
    %102 = arith.maximumf %100, %101 : vector<16x128xf32>
    %103 = arith.truncf %102 : vector<16x128xf32> to vector<16x128xbf16>
    %c0_44 = arith.constant 0 : index
    %c0_45 = arith.constant 0 : index
    %104 = vector.load %arg9[%c0_44, %c0_45] : memref<128x128xbf16, #tpu.memory_space<vmem>>, vector<128x128xbf16>
    %cst_46 = arith.constant dense<0.000000e+00> : vector<16x128xf32>
    %105 = tpu.matmul %103, %104, %cst_46 {dimension_numbers = #tpu.dot_dimension_numbers<[1], [0], [0], [1], [0, 0, 1, 1], [], []>} : vector<16x128xbf16>, vector<128x128xbf16>, vector<16x128xf32> -> vector<16x128xf32>
    %106 = vector.extract_strided_slice %105 {offsets = [0, 0], sizes = [8, 128], strides = [1, 1]} : vector<16x128xf32> to vector<8x128xf32>
    %cst_47 = arith.constant dense<0.000000e+00> : vector<128xf32>
    %107 = vector.multi_reduction <add>, %106, %cst_47 [0] : vector<8x128xf32> to vector<128xf32>
    %108 = vector.shape_cast %107 : vector<128xf32> to vector<1x128xf32>
    %cst_48 = arith.constant 1.250000e-01 : f32
    %109 = vector.broadcast %cst_48 : f32 to vector<1x128xf32>
    %110 = arith.mulf %108, %109 : vector<1x128xf32>
    %111 = vector.broadcast %110 : vector<1x128xf32> to vector<8x128xf32>
    %112 = arith.subf %106, %111 : vector<8x128xf32>
    %113 = arith.mulf %112, %112 : vector<8x128xf32>
    %cst_49 = arith.constant dense<0.000000e+00> : vector<128xf32>
    %114 = vector.multi_reduction <add>, %113, %cst_49 [0] : vector<8x128xf32> to vector<128xf32>
    %115 = vector.shape_cast %114 : vector<128xf32> to vector<1x128xf32>
    %cst_50 = arith.constant 1.250000e-01 : f32
    %116 = vector.broadcast %cst_50 : f32 to vector<1x128xf32>
    %117 = arith.mulf %115, %116 : vector<1x128xf32>
    %cst_51 = arith.constant 9.99999974E-6 : f32
    %118 = vector.broadcast %cst_51 : f32 to vector<1x128xf32>
    %119 = arith.addf %117, %118 : vector<1x128xf32>
    %120 = math.rsqrt %119 : vector<1x128xf32>
    %121 = vector.broadcast %120 : vector<1x128xf32> to vector<8x128xf32>
    %122 = arith.mulf %112, %121 : vector<8x128xf32>
    %123 = vector.extract_strided_slice %105 {offsets = [8, 0], sizes = [8, 128], strides = [1, 1]} : vector<16x128xf32> to vector<8x128xf32>
    %cst_52 = arith.constant dense<0.000000e+00> : vector<128xf32>
    %124 = vector.multi_reduction <add>, %123, %cst_52 [0] : vector<8x128xf32> to vector<128xf32>
    %125 = vector.shape_cast %124 : vector<128xf32> to vector<1x128xf32>
    %cst_53 = arith.constant 1.250000e-01 : f32
    %126 = vector.broadcast %cst_53 : f32 to vector<1x128xf32>
    %127 = arith.mulf %125, %126 : vector<1x128xf32>
    %128 = vector.broadcast %127 : vector<1x128xf32> to vector<8x128xf32>
    %129 = arith.subf %123, %128 : vector<8x128xf32>
    %130 = arith.mulf %129, %129 : vector<8x128xf32>
    %cst_54 = arith.constant dense<0.000000e+00> : vector<128xf32>
    %131 = vector.multi_reduction <add>, %130, %cst_54 [0] : vector<8x128xf32> to vector<128xf32>
    %132 = vector.shape_cast %131 : vector<128xf32> to vector<1x128xf32>
    %cst_55 = arith.constant 1.250000e-01 : f32
    %133 = vector.broadcast %cst_55 : f32 to vector<1x128xf32>
    %134 = arith.mulf %132, %133 : vector<1x128xf32>
    %cst_56 = arith.constant 9.99999974E-6 : f32
    %135 = vector.broadcast %cst_56 : f32 to vector<1x128xf32>
    %136 = arith.addf %134, %135 : vector<1x128xf32>
    %137 = math.rsqrt %136 : vector<1x128xf32>
    %138 = vector.broadcast %137 : vector<1x128xf32> to vector<8x128xf32>
    %139 = arith.mulf %129, %138 : vector<8x128xf32>
    %140 = tpu.concatenate %122, %139 in 0 : vector<8x128xf32>, vector<8x128xf32> -> vector<16x128xf32>
    %141 = vector.extract_strided_slice %140 {offsets = [0, 0], sizes = [8, 128], strides = [1, 1]} : vector<16x128xf32> to vector<8x128xf32>
    %142 = arith.truncf %141 : vector<8x128xf32> to vector<8x128xbf16>
    %143 = vector.extract_strided_slice %140 {offsets = [8, 0], sizes = [8, 128], strides = [1, 1]} : vector<16x128xf32> to vector<8x128xf32>
    %144 = arith.truncf %143 : vector<8x128xf32> to vector<8x128xbf16>
    %cst_57 = arith.constant dense<0.000000e+00> : vector<128x128xf32>
    %145 = tpu.matmul %142, %144, %cst_57 {dimension_numbers = #tpu.dot_dimension_numbers<[0], [0], [1], [1], [0, 1, 1, 1], [], []>} : vector<8x128xbf16>, vector<8x128xbf16>, vector<128x128xf32> -> vector<128x128xf32>
    %cst_58 = arith.constant 1.250000e-01 : f32
    %146 = vector.broadcast %cst_58 : f32 to vector<128x128xf32>
    %147 = arith.mulf %145, %146 : vector<128x128xf32>
    %148 = arith.extf %142 : vector<8x128xbf16> to vector<8x128xf32>
    %149 = arith.extf %144 : vector<8x128xbf16> to vector<8x128xf32>
    %150 = arith.mulf %148, %149 : vector<8x128xf32>
    %cst_59 = arith.constant dense<0.000000e+00> : vector<128xf32>
    %151 = vector.multi_reduction <add>, %150, %cst_59 [0] : vector<8x128xf32> to vector<128xf32>
    %152 = vector.shape_cast %151 : vector<128xf32> to vector<1x128xf32>
    %cst_60 = arith.constant 1.250000e-01 : f32
    %153 = vector.broadcast %cst_60 : f32 to vector<1x128xf32>
    %154 = arith.mulf %152, %153 : vector<1x128xf32>
    %155 = arith.mulf %147, %147 : vector<128x128xf32>
    %156 = vector.shape_cast %155 : vector<128x128xf32> to vector<1x128x128xf32>
    %cst_61 = arith.constant dense<0.000000e+00> : vector<1xf32>
    %157 = vector.multi_reduction <add>, %156, %cst_61 [1, 2] : vector<1x128x128xf32> to vector<1xf32>
    %158 = vector.shape_cast %157 : vector<1xf32> to vector<1x1x1xf32>
    %159 = vector.extract %158[0, 0, 0] : f32 from vector<1x1x1xf32>
    %160 = arith.mulf %154, %154 : vector<1x128xf32>
    %161 = vector.shape_cast %160 : vector<1x128xf32> to vector<1x1x128xf32>
    %cst_62 = arith.constant dense<0.000000e+00> : vector<1xf32>
    %162 = vector.multi_reduction <add>, %161, %cst_62 [1, 2] : vector<1x1x128xf32> to vector<1xf32>
    %163 = vector.shape_cast %162 : vector<1xf32> to vector<1x1x1xf32>
    %164 = vector.extract %163[0, 0, 0] : f32 from vector<1x1x1xf32>
    %cst_63 = arith.constant 1.000000e+00 : f32
    %165 = vector.broadcast %cst_63 : f32 to vector<1x128xf32>
    %166 = arith.subf %154, %165 : vector<1x128xf32>
    %167 = arith.mulf %166, %166 : vector<1x128xf32>
    %168 = vector.shape_cast %167 : vector<1x128xf32> to vector<1x1x128xf32>
    %cst_64 = arith.constant dense<0.000000e+00> : vector<1xf32>
    %169 = vector.multi_reduction <add>, %168, %cst_64 [1, 2] : vector<1x1x128xf32> to vector<1xf32>
    %170 = vector.shape_cast %169 : vector<1xf32> to vector<1x1x1xf32>
    %171 = vector.extract %170[0, 0, 0] : f32 from vector<1x1x1xf32>
    %c0_65 = arith.constant 0 : index
    %c0_66 = arith.constant 0 : index
    %172 = memref.load %arg10[%c0_65, %c0_66] : memref<1x1xf32, #tpu.memory_space<smem>>
    memref.store %171, %arg10[%c0_65, %c0_66] : memref<1x1xf32, #tpu.memory_space<smem>>
    %173 = arith.subf %159, %164 : f32
    %cst_67 = arith.constant 5.000000e-03 : f32
    %174 = arith.mulf %cst_67, %173 : f32
    %c0_68 = arith.constant 0 : index
    %c0_69 = arith.constant 0 : index
    %175 = memref.load %arg11[%c0_68, %c0_69] : memref<1x1xf32, #tpu.memory_space<smem>>
    memref.store %174, %arg11[%c0_68, %c0_69] : memref<1x1xf32, #tpu.memory_space<smem>>
    return
  }
}

</mosaic_0001>

<bundles_post_ra>
// kernel: tpu_custom_call.1
= control target key start
LH: loop header
LB: loop body
LE: loop exit
PB: predicated region body
PF: predicated region fallthrough
CT: control target
= control target key end

     0   :  { %17 = vsyncpa [#allocation3], 0  ;;  %s1444_s0 = inlined_call_operand.hbm [shape: bf16[8,32], index: 0, kind: input, shape index: {}]   ;;  %s1445_s1 = inlined_call_operand.hbm [shape: bf16[8,32], index: 1, kind: input, shape index: {}]   ;;  %s1446_s2 = inlined_call_operand.hbm [shape: bf16[32,32], index: 2, kind: input, shape index: {}]   ;;  %s1447_s3 = inlined_call_operand.hbm [shape: bf16[32,128], index: 3, kind: input, shape index: {}]   ;;  %s1448_s4 = inlined_call_operand.vmem [shape: f32[1,128], index: 4, kind: input, shape index: {}]   ;;  %s1449_s5 = inlined_call_operand.vmem [shape: f32[1,128], index: 5, kind: input, shape index: {}]   ;;  %s1450_s6 = inlined_call_operand.hbm [shape: bf16[128,128], index: 6, kind: input, shape index: {}]   ;;  %s1451_s7 = inlined_call_operand.vmem [shape: f32[1,128], index: 7, kind: input, shape index: {}]   ;;  %s1452_s8 = inlined_call_operand.vmem [shape: f32[1,128], index: 8, kind: input, shape index: {}]   ;;  %s1453_s9 = inlined_call_operand.hbm [shape: bf16[128,128], index: 9, kind: input, shape index: {}]   ;;  %s1454_s10 = inlined_call_operand.hbm [shape: f32[1,1], index: 10, kind: output, shape index: {0}]   ;;  %s1455_s11 = inlined_call_operand.hbm [shape: f32[1,1], index: 11, kind: output, shape index: {1}]  }
   0x1   :  { %18 = vsyncpa [#allocation6], 0 }
   0x2   :  { %19 = vsyncpa [#allocation9], 0 }
   0x3   :  { %20 = vsyncpa [#allocation12], 0 }
   0x4   :  { %21 = vsyncpa [#allocation4], 0 }
   0x5   :  { %22 = vsyncpa [#allocation15], 0  ;;  %s1275_s17 = smov [#allocation5]  }
   0x6   :  { %s39_s18 = sshll.u32 %s1275_s17, 4  ;;  %s40_s18 = int_to_ptr.vmem [resolvable:$true] %s39_s18 }
   0x7   :  { %s1135_s19 = scalar_lea.vmem %s40_s18, 64  ;;  %p1140_p1 = scmp.lt.s32.totalorder %s40_s18, %s40_s18 }
   0x8   :  { %p1136_p0 = scmp.ne.s32.totalorder %s40_s18, %s1135_s19  ;;  %p1141_p2 = scmp.lt.s32.totalorder %s1135_s19, %s1135_s19 }
   0xa   :  { %p1142_p3 = por %p1141_p2, %p1140_p1 }
   0xc   :  { %p1143_p4 = pnand %p1142_p3, %p1136_p0 }
   0xe   :  { %1146 = shalt.err (!%p1143_p4)
}
   0xf   :  { %42 = dma.hbm_to_vmem [thread:$0]  %s1445_s1, 64, %s40_s18, [#allocation6]  }
  0x10   :  { %s1276_s22 = smov [#allocation8]   ;;  %s1277_s24 = smov [#allocation2]  }
  0x11   :  { %s60_s23 = sshll.u32 %s1276_s22, 4  ;;  %s29_s25 = sshll.u32 %s1277_s24, 4  ;;  %s61_s23 = int_to_ptr.vmem [resolvable:$true] %s60_s23  ;;  %s30_s25 = int_to_ptr.vmem [resolvable:$true] %s29_s25 }
  0x12   :  { %s1155_s26 = scalar_lea.vmem %s61_s23, 256  ;;  %p1160_p6 = scmp.lt.s32.totalorder %s61_s23, %s61_s23 }
  0x13   :  { %p1156_p5 = scmp.ne.s32.totalorder %s61_s23, %s1155_s26  ;;  %p1161_p7 = scmp.lt.s32.totalorder %s1155_s26, %s1155_s26 }
  0x15   :  { %p1162_p8 = por %p1161_p7, %p1160_p6 }
  0x17   :  { %p1163_p9 = pnand %p1162_p8, %p1156_p5 }
  0x19   :  { %1166 = shalt.err (!%p1163_p9)
}
  0x1a   :  { %s1278_s27 = smov 64   ;;  %s1279_s28 = smov 4  }
  0x1b   :  { %66 = dma.hbm_to_vmem [thread:$0]  %s1447_s3, 256, %s61_s23, [#allocation9], %s1278_s27, %s1278_s27, %s1279_s28  }
  0x1c   :  { %s1175_s1 = scalar_lea.vmem %s30_s25, 64  ;;  %p1180_p11 = scmp.lt.s32.totalorder %s30_s25, %s30_s25 }
  0x1d   :  { %p1176_p10 = scmp.ne.s32.totalorder %s30_s25, %s1175_s1  ;;  %p1181_p12 = scmp.lt.s32.totalorder %s1175_s1, %s1175_s1 }
  0x1f   :  { %p1182_p13 = por %p1181_p12, %p1180_p11 }
  0x21   :  { %p1183_p0 = pnand %p1182_p13, %p1176_p10 }
  0x23   :  { %1186 = shalt.err (!%p1183_p0)
}
  0x24   :  { %32 = dma.hbm_to_vmem [thread:$0]  %s1444_s0, 64, %s30_s25, [#allocation3]  }
  0x25   :  { %s1280_s14 = smov [#allocation7]   ;;  %s1281_s16 = smov [#allocation10]  }
  0x26   :  { %s48_s15 = sshll.u32 %s1280_s14, 4  ;;  %s76_s17 = sshll.u32 %s1281_s16, 4  ;;  %s49_s15 = int_to_ptr.vmem [resolvable:$true] %s48_s15  ;;  %s77_s17 = int_to_ptr.vmem [resolvable:$true] %s76_s17 }
  0x27   :  { %s1195_s18 = scalar_lea.vmem %s49_s15, 256  ;;  %p1200_p2 = scmp.lt.s32.totalorder %s49_s15, %s49_s15 }
  0x28   :  { %p1196_p1 = scmp.ne.s32.totalorder %s49_s15, %s1195_s18  ;;  %p1201_p3 = scmp.lt.s32.totalorder %s1195_s18, %s1195_s18 }
  0x2a   :  { %p1202_p4 = por %p1201_p3, %p1200_p2 }
  0x2c   :  { %p1203_p5 = pnand %p1202_p4, %p1196_p1 }
  0x2e   :  { %1206 = shalt.err (!%p1203_p5)
}
  0x2f   :  { %54 = dma.hbm_to_vmem [thread:$0]  %s1446_s2, 256, %s49_s15, [#allocation6], %s1278_s27, %s1278_s27, %s1279_s28  }
  0x30   :  { %s1215_s0 = scalar_lea.vmem %s77_s17, 1024  ;;  %p1220_p7 = scmp.lt.s32.totalorder %s77_s17, %s77_s17 }
  0x31   :  { %p1216_p6 = scmp.ne.s32.totalorder %s77_s17, %s1215_s0  ;;  %p1221_p8 = scmp.lt.s32.totalorder %s1215_s0, %s1215_s0 }
  0x33   :  { %p1222_p9 = por %p1221_p8, %p1220_p7 }
  0x35   :  { %p1223_p10 = pnand %p1222_p9, %p1216_p6 }
  0x37   :  { %1226 = shalt.err (!%p1223_p10)
}
  0x38   :  { %82 = dma.hbm_to_vmem [thread:$0]  %s1450_s6, 1024, %s77_s17, [#allocation9], %s1278_s27, %s1278_s27, %s1279_s28  }
  0x39   :  { %s1282_s22 = smov [#allocation11]  }
  0x3a   :  { %s92_s23 = sshll.u32 %s1282_s22, 4  ;;  %s93_s23 = int_to_ptr.vmem [resolvable:$true] %s92_s23 }
  0x3b   :  { %s1235_s24 = scalar_lea.vmem %s93_s23, 1024  ;;  %p1240_p12 = scmp.lt.s32.totalorder %s93_s23, %s93_s23 }
  0x3c   :  { %p1236_p11 = scmp.ne.s32.totalorder %s93_s23, %s1235_s24  ;;  %p1241_p13 = scmp.lt.s32.totalorder %s1235_s24, %s1235_s24 }
  0x3e   :  { %p1242_p0 = por %p1241_p13, %p1240_p12 }
  0x40   :  { %p1243_p1 = pnand %p1242_p0, %p1236_p11 }
  0x42   :  { %1246 = shalt.err (!%p1243_p1)
}
  0x43   :  { %98 = dma.hbm_to_vmem [thread:$0]  %s1453_s9, 1024, %s93_s23, [#allocation12], %s1278_s27, %s1278_s27, %s1279_s28  }
  0x44   :  { %1263 = dma.done.wait [#allocation3], 64  }
  0x45   :  { %1264 = vsyncadd [#allocation3], 4294967232 }
  0x46   :  { %1265 = dma.done.wait [#allocation6], 320  }
  0x47   :  { %1266 = vsyncadd [#allocation6], 4294966976 }
  0x48   :  { %1267 = dma.done.wait [#allocation9], 1280  }
  0x49   :  { %1268 = vsyncadd [#allocation9], 4294966016 }
  0x4a   :  { %1269 = dma.done.wait [#allocation12], 1024  }
  0x4b   :  { %1270 = vsyncadd [#allocation12], 4294966272  ;;  %v1283_v0 = vmov 0.0   ;;  %vm1284_vm0 = vmmov 0   ;;  %v1095_v1 = vld [vmem:[#allocation7 + $0x8] sm:$0xff]   ;;  %v1096_v2 = vld [vmem:[#allocation7] sm:$0xff]   ;;  %v305_v62 = vlaneseq }
  0x4c   :  { %993 = vmatprep.subr.bf16.mxu0 %v1283_v0  ;;  %997 = vmatprep.mubr.msk.bf16.mxu0 %vm1284_vm0, %v1283_v0  ;;  %vm135_vm1 = vcmask 261120   ;;  %v118_v3 = vld [vmem:[#allocation2] sm:$0xf]  ;;  %v179_v4 = vld [vmem:[#allocation5] sm:$0xf]  ;;  %v1098_v6 = vld [vmem:[#allocation8] sm:$0xff]  }
  0x4d   :  { %1017 = vmatprep.subr.bf16.mxu1 %v1283_v0  ;;  %1033 = vmatprep.mubr.msk.bf16.mxu1 %vm1284_vm0, %v1283_v0  ;;  %v1097_v5 = vld [vmem:[#allocation8 + $0x8] sm:$0xff]   ;;  %v1100_v17 = vld [vmem:[#allocation10 + $0x30] sm:$0xff]   ;;  %v1101_v18 = vld [vmem:[#allocation10 + $0x28] sm:$0xff]   ;;  %v306_v63 = vshrl.u32 %v305_v62, 7  ;;  %vm697_vm2 = vcmask 1043456   ;;  %vm865_vm3 = vcmask 1040384  }
  0x4e   :  { %994 = vmatpush3.bf16.msra.mxu0 %v1095_v1  ;;  %v1099_v16 = vld [vmem:[#allocation10 + $0x38] sm:$0xff]   ;;  %v1102_v19 = vld [vmem:[#allocation10 + $0x20] sm:$0xff]   ;;  %v1104_v21 = vld [vmem:[#allocation10 + $0x10] sm:$0xff]   ;;  %vm672_vm4 = vcmask 64512   ;;  %s1285_s13 = smov [#allocation13]   ;;  %s1286_s16 = smov [#allocation14]  }
  0x4f   :  { %995 = vmatprep.subr.bf16.mxu0 %v1283_v0  ;;  %1018 = vmatpush3.bf16.msra.mxu1 %v1099_v16  ;;  %v1103_v20 = vld [vmem:[#allocation10 + $0x18] sm:$0xff]   ;;  %v1105_v22 = vld [vmem:[#allocation10 + $0x8] sm:$0xff]   ;;  %v1106_v23 = vld [vmem:[#allocation10] sm:$0xff]  }
  0x50   :  { %1019 = vmatprep.subr.bf16.mxu1 %v1283_v0  ;;  %v450_v62 = vld [vmem:[%s1451_s7] sm:$0x1] }
  0x52   :  { %996 = vmatpush3.bf16.msra.mxu0 %v1096_v2 }
  0x53   :  { %1001 = vmatprep.subr.bf16.mxu0 %v1283_v0  ;;  %1020 = vmatpush3.bf16.msra.mxu1 %v1100_v17  ;;  %v1107_v17 = vld [vmem:[#allocation11 + $0x38] sm:$0xff]  }
  0x54   :  { %1021 = vmatprep.subr.bf16.mxu1 %v1283_v0 }
  0x55   :  { %998 = vmatmul.mubr.msk.bf16.vlgmr.msra.gmra.mxu0 %vm135_vm1, %v118_v3 }
  0x56   :  { %1002 = vmatpush3.bf16.msra.mxu0 %v1095_v1  ;;  %1005 = vmatprep.mubr.msk.bf16.mxu0 %vm1284_vm0, %v1283_v0  ;;  %v284_v1 = vld [vmem:[%s1448_s4] sm:$0x1] }
  0x57   :  { %1003 = vmatprep.subr.bf16.mxu0 %v1283_v0  ;;  %1022 = vmatpush3.bf16.msra.mxu1 %v1101_v18  ;;  %v1108_v18 = vld [vmem:[#allocation11 + $0x30] sm:$0xff]  }
  0x58   :  { %1023 = vmatprep.subr.bf16.mxu1 %v1283_v0 }
  0x5a   :  { %1004 = vmatpush3.bf16.msra.mxu0 %v1096_v2  ;;  %v1408_v2 = vsub.s32 0, %v306_v63 }
  0x5b   :  { %1009 = vmatprep.subr.bf16.mxu0 %v1283_v0  ;;  %1024 = vmatpush3.bf16.msra.mxu1 %v1102_v19  ;;  %v1109_v19 = vld [vmem:[#allocation11 + $0x28] sm:$0xff]  }
  0x5c   :  { %1025 = vmatprep.subr.bf16.mxu1 %v1283_v0 }
  0x5d   :  { %1006 = vmatmul.mubr.msk.bf16.vlgmr.msra.gmra.mxu0 %vm135_vm1, %v179_v4 }
  0x5e   :  { %1013 = vmatprep.mubr.msk.bf16.mxu0 %vm1284_vm0, %v1283_v0  ;;  %1010 = vmatpush3.bf16.msra.mxu0 %v1097_v5 }
  0x5f   :  { %1011 = vmatprep.subr.bf16.mxu0 %v1283_v0  ;;  %1026 = vmatpush3.bf16.msra.mxu1 %v1103_v20  ;;  %v1110_v20 = vld [vmem:[#allocation11 + $0x20] sm:$0xff]  }
  0x60   :  { %1027 = vmatprep.subr.bf16.mxu1 %v1283_v0 }
  0x62   :  { %1012 = vmatpush3.bf16.msra.mxu0 %v1098_v6 }
  0x63   :  { %1037 = vmatprep.subr.bf16.mxu0 %v1283_v0  ;;  %1028 = vmatpush3.bf16.msra.mxu1 %v1104_v21  ;;  %v1111_v21 = vld [vmem:[#allocation11 + $0x18] sm:$0xff]  }
  0x64   :  { %1029 = vmatprep.subr.bf16.mxu1 %v1283_v0 }
  0x67   :  { %1030 = vmatpush3.bf16.msra.mxu1 %v1105_v22  ;;  %v1112_v22 = vld [vmem:[#allocation11 + $0x10] sm:$0xff]  }
  0x68   :  { %1031 = vmatprep.subr.bf16.mxu1 %v1283_v0 }
  0x6b   :  { %1032 = vmatpush3.bf16.msra.mxu1 %v1106_v23  ;;  %v1113_v23 = vld [vmem:[#allocation11 + $0x8] sm:$0xff]  }
 0x115   :  { %v173_v7 = vpop.f32.mrf.mxu0 }
 0x117   :  { %v999_v8 = vpop.f32.mrf.mxu0 }
 0x119   :  { %v176_v9 = vpop.f32.mrf.mxu0 }
 0x11a   :  { %v930_v9 = vld [vmem:[%s1449_s5] ss:$0 sm:$0xff] }
 0x11b   :  { %v1000_v10 = vpop.f32.mrf.mxu0 }
 0x11d   :  { %v217_v11 = vpop.f32.mrf.mxu0 }
 0x11e   :  { %v223_v12 = vpack.c.bf16 %v217_v11, %v173_v7 }
 0x11f   :  { %v1007_v13 = vpop.f32.mrf.mxu0 }
 0x120   :  { %1014 = vmatmul.mubr.msk.bf16.vlgmr.msra.gmra.mxu0 %vm135_vm1, %v223_v12 }
 0x121   :  { %v220_v14 = vpop.f32.mrf.mxu0  ;;  %1053 = vmatprep.mubr.msk.bf16.mxu0 %vm1284_vm0, %v1283_v0  ;;  %1038 = vmatpush3.bf16.msra.mxu0 %v1107_v17 }
 0x122   :  { %1039 = vmatprep.subr.bf16.mxu0 %v1283_v0 }
 0x123   :  { %v1008_v15 = vpop.f32.mrf.mxu0 }
 0x125   :  { %1040 = vmatpush3.bf16.msra.mxu0 %v1108_v18 }
 0x126   :  { %1041 = vmatprep.subr.bf16.mxu0 %v1283_v0 }
 0x129   :  { %1042 = vmatpush3.bf16.msra.mxu0 %v1109_v19 }
 0x12a   :  { %1043 = vmatprep.subr.bf16.mxu0 %v1283_v0 }
 0x12d   :  { %1044 = vmatpush3.bf16.msra.mxu0 %v1110_v20 }
 0x12e   :  { %1045 = vmatprep.subr.bf16.mxu0 %v1283_v0 }
 0x131   :  { %1046 = vmatpush3.bf16.msra.mxu0 %v1111_v21 }
 0x132   :  { %1047 = vmatprep.subr.bf16.mxu0 %v1283_v0 }
 0x135   :  { %1048 = vmatpush3.bf16.msra.mxu0 %v1112_v22 }
 0x136   :  { %1049 = vmatprep.subr.bf16.mxu0 %v1283_v0 }
 0x139   :  { %1050 = vmatpush3.bf16.msra.mxu0 %v1113_v23 }
 0x13a   :  { %1051 = vmatprep.subr.bf16.mxu0 %v1283_v0 }
 0x1e0   :  { %v277_v24 = vpop.f32.mrf.mxu0 }
 0x1e1   :  { %v286_v25 = vrot.slane %v277_v24, 4 }
 0x1e2   :  { %v1015_v26 = vpop.f32.mrf.mxu0 }
 0x1e3   :  { %v287_v27 = vadd.f32 %v286_v25, %v277_v24 }
 0x1e4   :  { %v280_v28 = vpop.f32.mrf.mxu0 }
 0x1e5   :  { %v288_v29 = vrot.slane %v287_v27, 2  ;;  %v317_v30 = vrot.slane %v280_v28, 4 }
 0x1e6   :  { %v1016_v31 = vpop.f32.mrf.mxu0 }
 0x1e7   :  { %v289_v32 = vadd.f32 %v288_v29, %v287_v27  ;;  %v318_v33 = vadd.f32 %v317_v30, %v280_v28 }
 0x1e9   :  { %v290_v34 = vrot.slane %v289_v32, 1  ;;  %v319_v35 = vrot.slane %v318_v33, 2 }
 0x1eb   :  { %v291_v36 = vadd.f32 %v290_v34, %v289_v32  ;;  %v320_v37 = vadd.f32 %v319_v35, %v318_v33 }
 0x1ed   :  { %v292_v38 = vmul.f32 0.125, %v291_v36  ;;  %v321_v39 = vrot.slane %v320_v37, 1 }
 0x1ef   :  { %v293_v40 = vsub.f32 %v277_v24, %v292_v38  ;;  %v322_v41 = vadd.f32 %v321_v39, %v320_v37  ;;  %v1114_v24 = vld [vmem:[#allocation11] sm:$0xff]  }
 0x1f0   :  { %1052 = vmatpush3.bf16.msra.mxu0 %v1114_v24 }
 0x1f1   :  { %v294_v42 = vmul.f32 %v293_v40, %v293_v40  ;;  %v323_v43 = vmul.f32 0.125, %v322_v41 }
 0x1f3   :  { %v295_v44 = vrot.slane %v294_v42, 4  ;;  %v324_v45 = vsub.f32 %v280_v28, %v323_v43 }
 0x1f5   :  { %v296_v46 = vadd.f32 %v295_v44, %v294_v42  ;;  %v325_v47 = vmul.f32 %v324_v45, %v324_v45 }
 0x1f7   :  { %v297_v48 = vrot.slane %v296_v46, 2  ;;  %v326_v49 = vrot.slane %v325_v47, 4 }
 0x1f9   :  { %v298_v50 = vadd.f32 %v297_v48, %v296_v46  ;;  %v327_v51 = vadd.f32 %v326_v49, %v325_v47 }
 0x1fb   :  { %v299_v52 = vrot.slane %v298_v50, 1  ;;  %v328_v53 = vrot.slane %v327_v51, 2 }
 0x1fd   :  { %v300_v54 = vadd.f32 %v299_v52, %v298_v50  ;;  %v329_v55 = vadd.f32 %v328_v53, %v327_v51 }
 0x1ff   :  { %v301_v56 = vmul.f32 0.125, %v300_v54  ;;  %v330_v57 = vrot.slane %v329_v55, 1 }
 0x201   :  { %v302_v58 = vadd.f32 1e-05, %v301_v56  ;;  %v331_v59 = vadd.f32 %v330_v57, %v329_v55 }
 0x203   :  { %1115 = vrsqrt.f32 %v302_v58  ;;  %v332_v60 = vmul.f32 0.125, %v331_v59 }
 0x205   :  { %v333_v61 = vadd.f32 1e-05, %v332_v60 }
 0x207   :  { %1117 = vrsqrt.f32 %v333_v61 }
 0x210   :  { %v1116_v3 = vpop.eup %1115 }
 0x211   :  { %v304_v4 = vmul.f32 %v1116_v3, %v284_v1 }
 0x213   :  { %v308_v5 = vrot.slane %v304_v4, %v1408_v2 }
 0x214   :  { %v1118_v6 = vpop.eup %1117 }
 0x215   :  { %v309_v7 = vmul.f32 %v308_v5, %v293_v40  ;;  %v335_v8 = vmul.f32 %v1118_v6, %v284_v1 }
 0x217   :  { %v339_v10 = vrot.slane %v335_v8, %v1408_v2  ;;  %v316_v12 = vadd.f32 %v930_v9, %v309_v7  ;;  %v939_v7 = vld [vmem:[%s1452_s8] ss:$0 sm:$0xff] }
 0x219   :  { %v340_v11 = vmul.f32 %v339_v10, %v324_v45  ;;  %v342_v14 = vmax.f32 %v316_v12, 0.0 }
 0x21b   :  { %v341_v13 = vadd.f32 %v930_v9, %v340_v11 }
 0x21d   :  { %v343_v15 = vmax.f32 %v341_v13, 0.0 }
 0x21f   :  { %v344_v16 = vpack.c.bf16 %v343_v15, %v342_v14 }
 0x221   :  { %1034 = vmatmul.mubr.bf16.vlgmr.msra.gmra.mxu1 %v344_v16 }
 0x2e1   :  { %v443_v25 = vpop.f32.mrf.mxu1 }
 0x2e2   :  { %v452_v26 = vrot.slane %v443_v25, 4 }
 0x2e3   :  { %v1035_v27 = vpop.f32.mrf.mxu1 }
 0x2e4   :  { %v453_v28 = vadd.f32 %v452_v26, %v443_v25 }
 0x2e5   :  { %v446_v29 = vpop.f32.mrf.mxu1 }
 0x2e6   :  { %v454_v30 = vrot.slane %v453_v28, 2  ;;  %v483_v31 = vrot.slane %v446_v29, 4 }
 0x2e7   :  { %v1036_v32 = vpop.f32.mrf.mxu1 }
 0x2e8   :  { %v455_v33 = vadd.f32 %v454_v30, %v453_v28  ;;  %v484_v34 = vadd.f32 %v483_v31, %v446_v29 }
 0x2ea   :  { %v456_v35 = vrot.slane %v455_v33, 1  ;;  %v485_v36 = vrot.slane %v484_v34, 2 }
 0x2ec   :  { %v457_v37 = vadd.f32 %v456_v35, %v455_v33  ;;  %v486_v38 = vadd.f32 %v485_v36, %v484_v34 }
 0x2ee   :  { %v458_v39 = vmul.f32 0.125, %v457_v37  ;;  %v487_v40 = vrot.slane %v486_v38, 1 }
 0x2f0   :  { %v459_v41 = vsub.f32 %v443_v25, %v458_v39  ;;  %v488_v0 = vadd.f32 %v487_v40, %v486_v38 }
 0x2f2   :  { %v460_v42 = vmul.f32 %v459_v41, %v459_v41  ;;  %v489_v43 = vmul.f32 0.125, %v488_v0 }
 0x2f4   :  { %v461_v44 = vrot.slane %v460_v42, 4  ;;  %v490_v45 = vsub.f32 %v446_v29, %v489_v43 }
 0x2f6   :  { %v462_v46 = vadd.f32 %v461_v44, %v460_v42  ;;  %v491_v47 = vmul.f32 %v490_v45, %v490_v45 }
 0x2f8   :  { %v463_v48 = vrot.slane %v462_v46, 2  ;;  %v492_v49 = vrot.slane %v491_v47, 4 }
 0x2fa   :  { %v464_v50 = vadd.f32 %v463_v48, %v462_v46  ;;  %v493_v51 = vadd.f32 %v492_v49, %v491_v47 }
 0x2fc   :  { %v465_v52 = vrot.slane %v464_v50, 1  ;;  %v494_v53 = vrot.slane %v493_v51, 2 }
 0x2fe   :  { %v466_v54 = vadd.f32 %v465_v52, %v464_v50  ;;  %v495_v55 = vadd.f32 %v494_v53, %v493_v51 }
 0x300   :  { %v467_v56 = vmul.f32 0.125, %v466_v54  ;;  %v496_v57 = vrot.slane %v495_v55, 1 }
 0x302   :  { %v468_v58 = vadd.f32 1e-05, %v467_v56  ;;  %v497_v59 = vadd.f32 %v496_v57, %v495_v55 }
 0x304   :  { %1119 = vrsqrt.f32 %v468_v58  ;;  %v498_v60 = vmul.f32 0.125, %v497_v59 }
 0x306   :  { %v499_v61 = vadd.f32 1e-05, %v498_v60 }
 0x308   :  { %1121 = vrsqrt.f32 %v499_v61 }
 0x311   :  { %v1120_v63 = vpop.eup %1119 }
 0x312   :  { %v470_v1 = vmul.f32 %v1120_v63, %v450_v62 }
 0x314   :  { %v474_v3 = vrot.slane %v470_v1, %v1408_v2 }
 0x315   :  { %v1122_v4 = vpop.eup %1121 }
 0x316   :  { %v475_v5 = vmul.f32 %v474_v3, %v459_v41  ;;  %v501_v6 = vmul.f32 %v1122_v4, %v450_v62 }
 0x318   :  { %v505_v8 = vrot.slane %v501_v6, %v1408_v2  ;;  %v482_v9 = vadd.f32 %v939_v7, %v475_v5 }
 0x31a   :  { %v506_v10 = vmul.f32 %v505_v8, %v490_v45  ;;  %v508_v12 = vmax.f32 %v482_v9, 0.0 }
 0x31c   :  { %v507_v11 = vadd.f32 %v939_v7, %v506_v10 }
 0x31e   :  { %v509_v13 = vmax.f32 %v507_v11, 0.0 }
 0x320   :  { %v510_v14 = vpack.c.bf16 %v509_v13, %v508_v12 }
 0x322   :  { %1054 = vmatmul.mubr.bf16.vlgmr.msra.gmra.mxu0 %v510_v14 }
 0x3e2   :  { %v609_v15 = vpop.f32.mrf.mxu0 }
 0x3e3   :  { %v616_v16 = vrot.slane %v609_v15, 4 }
 0x3e4   :  { %v1055_v17 = vpop.f32.mrf.mxu0 }
 0x3e5   :  { %v617_v18 = vadd.f32 %v616_v16, %v609_v15 }
 0x3e6   :  { %v612_v19 = vpop.f32.mrf.mxu0 }
 0x3e7   :  { %v618_v20 = vrot.slane %v617_v18, 2  ;;  %v635_v21 = vrot.slane %v612_v19, 4 }
 0x3e8   :  { %v1056_v22 = vpop.f32.mrf.mxu0 }
 0x3e9   :  { %v619_v23 = vadd.f32 %v618_v20, %v617_v18  ;;  %v636_v24 = vadd.f32 %v635_v21, %v612_v19 }
 0x3eb   :  { %v620_v25 = vrot.slane %v619_v23, 1  ;;  %v637_v26 = vrot.slane %v636_v24, 2 }
 0x3ed   :  { %v621_v2 = vadd.f32 %v620_v25, %v619_v23  ;;  %v638_v27 = vadd.f32 %v637_v26, %v636_v24 }
 0x3ef   :  { %v622_v28 = vmul.f32 0.125, %v621_v2  ;;  %v639_v29 = vrot.slane %v638_v27, 1 }
 0x3f1   :  { %v623_v30 = vsub.f32 %v609_v15, %v622_v28  ;;  %v640_v31 = vadd.f32 %v639_v29, %v638_v27 }
 0x3f3   :  { %v624_v32 = vmul.f32 %v623_v30, %v623_v30  ;;  %v641_v33 = vmul.f32 0.125, %v640_v31 }
 0x3f5   :  { %v625_v34 = vrot.slane %v624_v32, 4  ;;  %v642_v35 = vsub.f32 %v612_v19, %v641_v33 }
 0x3f7   :  { %v626_v36 = vadd.f32 %v625_v34, %v624_v32  ;;  %v643_v37 = vmul.f32 %v642_v35, %v642_v35 }
 0x3f9   :  { %v627_v38 = vrot.slane %v626_v36, 2  ;;  %v644_v39 = vrot.slane %v643_v37, 4 }
 0x3fb   :  { %v628_v40 = vadd.f32 %v627_v38, %v626_v36  ;;  %v645_v41 = vadd.f32 %v644_v39, %v643_v37 }
 0x3fd   :  { %v629_v0 = vrot.slane %v628_v40, 1  ;;  %v646_v42 = vrot.slane %v645_v41, 2 }
 0x3ff   :  { %v630_v43 = vadd.f32 %v629_v0, %v628_v40  ;;  %v647_v44 = vadd.f32 %v646_v42, %v645_v41 }
 0x401   :  { %v631_v45 = vmul.f32 0.125, %v630_v43  ;;  %v648_v46 = vrot.slane %v647_v44, 1 }
 0x403   :  { %v632_v47 = vadd.f32 1e-05, %v631_v45  ;;  %v649_v48 = vadd.f32 %v648_v46, %v647_v44 }
 0x405   :  { %1123 = vrsqrt.f32 %v632_v47  ;;  %v650_v49 = vmul.f32 0.125, %v649_v48 }
 0x407   :  { %v651_v50 = vadd.f32 1e-05, %v650_v49 }
 0x409   :  { %1125 = vrsqrt.f32 %v651_v50 }
 0x412   :  { %v1124_v51 = vpop.eup %1123 }
 0x413   :  { %v634_v52 = vmul.f32 %v1124_v51, %v623_v30 }
 0x415   :  { %v654_v53 = vpack.c.bf16 %v634_v52, %v634_v52 }
 0x416   :  { %v1126_v54 = vpop.eup %1125 }
 0x417   :  { %v653_v55 = vmul.f32 %v1126_v54, %v642_v35  ;;  %656 = vxpose.xlu0.c.b16.start.end [1/1] (short) %v654_v53, 128  ;;  %v814_v57 = vunpack.c.l.bf16 %v654_v53 }
 0x419   :  { %v655_v56 = vpack.c.bf16 %v653_v55, %v653_v55 }
 0x41b   :  { %v815_v58 = vunpack.c.l.bf16 %v655_v56  ;;  %1075 = vmatprep.subr.msk.bf16.mxu1 %vm697_vm2, %v655_v56  ;;  %v699_v59 = vsel %vm697_vm2, %v655_v56, 0 }
 0x41c   :  { %1058 = vmatpush3.bf16.msra.mxu1 %v699_v59 }
 0x41d   :  { %v816_v60 = vmul.f32 %v815_v58, %v814_v57 }
 0x41f   :  { %v817_v61 = vrot.slane %v816_v60, 4 }
 0x421   :  { %v818_v62 = vadd.f32 %v817_v61, %v816_v60 }
 0x423   :  { %v819_v63 = vrot.slane %v818_v62, 2 }
 0x425   :  { %v820_v1 = vadd.f32 %v819_v63, %v818_v62 }
 0x427   :  { %v821_v3 = vrot.slane %v820_v1, 1 }
 0x429   :  { %v822_v4 = vadd.f32 %v821_v3, %v820_v1 }
 0x42b   :  { %v823_v5 = vmul.f32 0.125, %v822_v4 }
 0x42d   :  { %v864_v6 = vmul.f32 %v823_v5, %v823_v5  ;;  %v956_v7 = vadd.f32 -1.0, %v823_v5 }
 0x42f   :  { %v866_v8 = vsel %vm865_vm3, %v864_v6, 0.0  ;;  %v877_v9 = vmul.f32 %v956_v7, %v956_v7 }
 0x430   :  { %867 = vadd.xlane.f32.xlu1 %v866_v8 }
 0x431   :  { %v878_v10 = vsel %vm865_vm3, %v877_v9, 0.0 }
 0x434   :  { %879 = vadd.xlane.f32.xlu1 %v878_v10 }
 0x479   :  { %v664_v11 = vpop.trf.xlu0 }
 0x47a   :  { %1059 = vmatprep.mubr.msk.bf16.mxu1 %vm672_vm4, %v664_v11 }
 0x47d   :  { %v665_v12 = vpop.trf.xlu0 }
 0x47e   :  { %1060 = vmatmul.mubr.msk.bf16.vlgmr.msra.gmra.mxu1 %vm672_vm4, %v665_v12 }
 0x481   :  { %v666_v13 = vpop.trf.xlu0 }
 0x482   :  { %1063 = vmatprep.mubr.msk.bf16.mxu1 %vm672_vm4, %v666_v13 }
 0x485   :  { %v667_v14 = vpop.trf.xlu0 }
 0x486   :  { %1064 = vmatmul.mubr.msk.bf16.gmra.mxu1 %vm672_vm4, %v667_v14 }
 0x489   :  { %v668_v15 = vpop.trf.xlu0 }
 0x48a   :  { %1067 = vmatprep.mubr.msk.bf16.mxu1 %vm672_vm4, %v668_v15 }
 0x48d   :  { %v669_v16 = vpop.trf.xlu0 }
 0x48e   :  { %1068 = vmatmul.mubr.msk.bf16.gmra.mxu1 %vm672_vm4, %v669_v16 }
 0x491   :  { %v670_v17 = vpop.trf.xlu0 }
 0x492   :  { %1071 = vmatprep.mubr.msk.bf16.mxu1 %vm672_vm4, %v670_v17 }
 0x495   :  { %v671_v18 = vpop.trf.xlu0 }
 0x496   :  { %1072 = vmatmul.mubr.msk.bf16.gmra.mxu1 %vm672_vm4, %v671_v18 }
 0x4b9   :  { %v868_v18 = vpop.xlane.xlu1 %867 }
 0x53e   :  { %v1061_v19 = vpop.f32.mrf.mxu1 }
 0x53f   :  { %v800_v24 = vmul.f32 0.125, %v1061_v19  ;;  %v880_v19 = vpop.xlane.xlu1 %879 }
 0x540   :  { %v735_v20 = vpop.f32.mrf.mxu1 }
 0x541   :  { %v798_v22 = vmul.f32 0.125, %v735_v20  ;;  %v826_v30 = vmul.f32 %v800_v24, %v800_v24  ;;  %v869_v20 = vrot.slane %v868_v18, 4 }
 0x542   :  { %v1062_v21 = vpop.f32.mrf.mxu1 }
 0x543   :  { %v824_v2 = vmul.f32 %v798_v22, %v798_v22  ;;  %v801_v27 = vmul.f32 0.125, %v1062_v21  ;;  %v881_v21 = vrot.slane %v880_v19, 4  ;;  %v870_v22 = vadd.f32 %v869_v20, %v868_v18 }
 0x544   :  { %v738_v23 = vpop.f32.mrf.mxu1 }
 0x545   :  { %v799_v25 = vmul.f32 0.125, %v738_v23  ;;  %v827_v34 = vmul.f32 %v801_v27, %v801_v27  ;;  %v882_v23 = vadd.f32 %v881_v21, %v880_v19  ;;  %v871_v24 = vrot.slane %v870_v22, 2 }
 0x546   :  { %v1065_v26 = vpop.f32.mrf.mxu1 }
 0x547   :  { %v825_v28 = vmul.f32 %v799_v25, %v799_v25  ;;  %v804_v37 = vmul.f32 0.125, %v1065_v26  ;;  %v883_v26 = vrot.slane %v882_v23, 2 }
 0x548   :  { %v751_v29 = vpop.f32.mrf.mxu1 }
 0x549   :  { %v840_v31 = vadd.f32 %v825_v28, %v824_v2  ;;  %v802_v32 = vmul.f32 0.125, %v751_v29  ;;  %v830_v45 = vmul.f32 %v804_v37, %v804_v37  ;;  %v872_v28 = vadd.f32 %v871_v24, %v870_v22 }
 0x54a   :  { %v1066_v33 = vpop.f32.mrf.mxu1  ;;  %v884_v29 = vadd.f32 %v883_v26, %v882_v23 }
 0x54b   :  { %v841_v35 = vadd.f32 %v840_v31, %v826_v30  ;;  %v828_v38 = vmul.f32 %v802_v32, %v802_v32  ;;  %v805_v42 = vmul.f32 0.125, %v1066_v33  ;;  %v873_v32 = vrot.slane %v872_v28, 1 }
 0x54c   :  { %v754_v36 = vpop.f32.mrf.mxu1 }
 0x54d   :  { %v842_v39 = vadd.f32 %v841_v35, %v827_v34  ;;  %v803_v40 = vmul.f32 0.125, %v754_v36  ;;  %v831_v49 = vmul.f32 %v805_v42, %v805_v42  ;;  %v885_v34 = vrot.slane %v884_v29, 1 }
 0x54e   :  { %v1069_v41 = vpop.f32.mrf.mxu1  ;;  %v874_v36 = vadd.f32 %v873_v32, %v872_v28 }
 0x54f   :  { %v843_v0 = vadd.f32 %v842_v39, %v828_v38  ;;  %v829_v43 = vmul.f32 %v803_v40, %v803_v40  ;;  %v808_v52 = vmul.f32 0.125, %v1069_v41  ;;  %v886_v37 = vadd.f32 %v885_v34, %v884_v29 }
 0x550   :  { %v767_v44 = vpop.f32.mrf.mxu1 }
 0x551   :  { %v844_v46 = vadd.f32 %v843_v0, %v829_v43  ;;  %v806_v47 = vmul.f32 0.125, %v767_v44  ;;  %v834_v61 = vmul.f32 %v808_v52, %v808_v52 }
 0x552   :  { %v1070_v48 = vpop.f32.mrf.mxu1 }
 0x553   :  { %v845_v50 = vadd.f32 %v844_v46, %v830_v45  ;;  %v832_v53 = vmul.f32 %v806_v47, %v806_v47  ;;  %v809_v58 = vmul.f32 0.125, %v1070_v48 }
 0x554   :  { %v770_v51 = vpop.f32.mrf.mxu1 }
 0x555   :  { %v846_v54 = vadd.f32 %v845_v50, %v831_v49  ;;  %v807_v55 = vmul.f32 0.125, %v770_v51  ;;  %v835_v3 = vmul.f32 %v809_v58, %v809_v58 }
 0x556   :  { %v1073_v56 = vpop.f32.mrf.mxu1 }
 0x557   :  { %v847_v57 = vadd.f32 %v846_v54, %v832_v53  ;;  %v833_v59 = vmul.f32 %v807_v55, %v807_v55  ;;  %v812_v6 = vmul.f32 0.125, %v1073_v56 }
 0x558   :  { %v783_v60 = vpop.f32.mrf.mxu1 }
 0x559   :  { %v848_v62 = vadd.f32 %v847_v57, %v833_v59  ;;  %v810_v63 = vmul.f32 0.125, %v783_v60  ;;  %v838_v13 = vmul.f32 %v812_v6, %v812_v6 }
 0x55a   :  { %v1074_v1 = vpop.f32.mrf.mxu1 }
 0x55b   :  { %v849_v4 = vadd.f32 %v848_v62, %v834_v61  ;;  %v836_v7 = vmul.f32 %v810_v63, %v810_v63  ;;  %v813_v11 = vmul.f32 0.125, %v1074_v1 }
 0x55c   :  { %v786_v5 = vpop.f32.mrf.mxu1 }
 0x55d   :  { %v850_v8 = vadd.f32 %v849_v4, %v835_v3  ;;  %v811_v9 = vmul.f32 0.125, %v786_v5  ;;  %v839_v15 = vmul.f32 %v813_v11, %v813_v11 }
 0x55f   :  { %v851_v10 = vadd.f32 %v850_v8, %v836_v7  ;;  %v837_v12 = vmul.f32 %v811_v9, %v811_v9 }
 0x561   :  { %v852_v14 = vadd.f32 %v851_v10, %v837_v12 }
 0x563   :  { %v853_v16 = vadd.f32 %v852_v14, %v838_v13 }
 0x565   :  { %v854_v17 = vadd.f32 %v853_v16, %v839_v15 }
 0x567   :  { %855 = vadd.xlane.f32.xlu0 %v854_v17 }
 0x5f0   :  { %v856_v25 = vpop.xlane.xlu0 %855 }
 0x5f1   :  { %v857_v2 = vrot.slane %v856_v25, 4 }
 0x5f3   :  { %v858_v27 = vadd.f32 %v857_v2, %v856_v25 }
 0x5f5   :  { %v859_v30 = vrot.slane %v858_v27, 2 }
 0x5f7   :  { %v860_v31 = vadd.f32 %v859_v30, %v858_v27 }
 0x5f9   :  { %v861_v33 = vrot.slane %v860_v31, 1 }
 0x5fb   :  { %v862_v35 = vadd.f32 %v861_v33, %v860_v31 }
 0x5fd   :  { %1076 = vpush %v862_v35 }
 0x5fe   :  { %1078 = vpush %v874_v36 }
 0x5ff   :  { %1080 = vpush %v886_v37 }
 0x62e   :  { %s1077_s7 = spop %1076 }
 0x62f   :  { %s1079_s8 = spop %1078 }
 0x630   :  { %s890_s30 = ssub.f32 %s1077_s7, %s1079_s8  ;;  %s1081_s1 = spop %1080 }
 0x631   :  { %889 = sst [smem:[#allocation13]] %s1081_s1 }
 0x632   :  { %s891_s12 = smul.f32 0.005, %s890_s30 }
 0x633   :  { %901 = dma.smem_to_hbm %s1285_s13, 16, %s1454_s10, [#allocation4]  }
 0x634   :  { %893 = sst [smem:[#allocation14]] %s891_s12 }
 0x635   :  { %909 = dma.smem_to_hbm %s1286_s16, 16, %s1455_s11, [#allocation15]  }
 0x636   :  { %1271 = dma.done.wait [#allocation4], 16  }
 0x637   :  { %1272 = vsyncadd [#allocation4], 4294967280 }
 0x638   :  { %1273 = dma.done.wait [#allocation15], 16  }
 0x639   :  { %1274 = vsyncadd [#allocation15], 4294967280 }
 0x63a   :  { %916 = sfence }
 0x63b   :  { %917 = vsyncpa [#allocation3], 1 }
 0x63c   :  { %918 = vsyncpa [#allocation6], 1 }
 0x63d   :  { %919 = vsyncpa [#allocation9], 1 }
 0x63e   :  { %920 = vsyncpa [#allocation12], 1 }
 0x63f   :  { %921 = vsyncpa [#allocation4], 1 }
 0x640   :  { %922 = vsyncpa [#allocation15], 1 }

</bundles_post_ra>
